<compile_context>
chip_gen: v6e
topology: v6e:2x2x1
jax: 0.10.0
libtpu: 0.0.40
codegen_flags: <defaults>
</compile_context>

<pallas_src>
import math

import jax
import jax.numpy as jnp
import numpy as np
from jax.experimental import pallas as pl
from jax.experimental.pallas import tpu as pltpu


# ----------------------------------------------------------------------------
# Kernel 1: Euler rollout of HamiltonianDynamics (single invocation, no grid)
# ----------------------------------------------------------------------------
def rollout_kernel(dts_ref, ini_pos_ref, bias_eff_ref, w1p_ref, w2t_ref, b2_ref,
                   traj_pos_ref, traj_vel_ref):
    T = traj_pos_ref.shape[0]

    # Loop-invariant loads: weights / hoisted bias live in vregs for all steps.
    w1x = w1p_ref[0:1, :]            # (1, H1)  W1 row for pos.x
    w1y = w1p_ref[1:2, :]            # (1, H1)  W1 row for pos.y
    bias_eff = bias_eff_ref[...]     # (N, H1)  diam * W1[diam] + b1  (hoisted)
    w2t = w2t_ref[...]               # (2, H1)  W2^T, lane-dense
    b2 = b2_ref[...]                 # (1, 2)

    pos = ini_pos_ref[...]           # (N, 2)
    vel = jnp.zeros_like(pos)

    # Fully unrolled static time loop (T is small and static): every SMEM read
    # and trajectory store uses a static index, so the scheduler sees the
    # whole dependence chain (== lax.fori_loop(..., unroll=True) for this T).
    for t in range(T):
        dt = dts_ref[t]              # scalar step size from SMEM

        # First layer (K=2): two VPU broadcast FMAs instead of an MXU matmul.
        h = jnp.maximum(pos[:, 0:1] * w1x + pos[:, 1:2] * w1y + bias_eff, 0.0)
        # Second layer: contract on the lane axis against the (2, H1) weights.
        hm = jnp.tanh(
            jax.lax.dot_general(h, w2t, (((1,), (1,)), ((), ())),
                                preferred_element_type=jnp.float32) + b2)

        # Euler step: dpos = vel (old), dvel = -hm (from old pos).
        pos, vel = pos + dt * vel, vel - dt * hm

        traj_pos_ref[t] = pos        # VMEM-resident output; single DMA at end
        traj_vel_ref[t] = vel


def rollout(dts, ini_pos, bias_eff, w1p, w2t, b2):
    T = dts.shape[0]
    N, _ = bias_eff.shape
    vmem = pl.BlockSpec(memory_space=pltpu.MemorySpace.VMEM)
    return pl.pallas_call(
        rollout_kernel,
        out_shape=(jax.ShapeDtypeStruct((T, N, 2), jnp.float32),
                   jax.ShapeDtypeStruct((T, N, 2), jnp.float32)),
        in_specs=[
            pl.BlockSpec(memory_space=pltpu.MemorySpace.SMEM),  # dts (scalars)
            vmem,                                               # ini_pos
            vmem,                                               # bias_eff
            vmem,                                               # W1 rows x/y
            vmem,                                               # W2^T
            vmem,                                               # b2
        ],
        out_specs=(vmem, vmem),
    )(dts, ini_pos, bias_eff, w1p, w2t, b2)


def rollout_ref(dts, ini_pos, bias_eff, w1p, w2t, b2):
    def step(carry, dt):
        pos, vel = carry
        h = jnp.maximum(pos @ w1p + bias_eff, 0.0)
        dvel = -jnp.tanh(h @ w2t.T + b2)
        new_pos = pos + dt * vel
        new_vel = vel + dt * dvel
        return (new_pos, new_vel), (new_pos, new_vel)
    _, (tp, tv) = jax.lax.scan(step, (ini_pos, jnp.zeros_like(ini_pos)), dts)
    return tp, tv


# ----------------------------------------------------------------------------
# Kernel 2: InstantaneousStateChange net (4-layer MLP, hidden 1024)
#   w2, w3 stored bf16 (f32 accumulation), w4 stored transposed (out, 1024).
# ----------------------------------------------------------------------------
def inst_mlp_kernel(z_ref, w1, b1, w2, b2, w3, b3, w4t, b4, out_ref):
    h = jnp.maximum(jnp.dot(z_ref[...], w1[...],
                            preferred_element_type=jnp.float32) + b1[...], 0.0)
    h = jnp.maximum(jnp.dot(h.astype(jnp.bfloat16), w2[...],
                            preferred_element_type=jnp.float32) + b2[...], 0.0)
    h = jnp.maximum(jnp.dot(h.astype(jnp.bfloat16), w3[...],
                            preferred_element_type=jnp.float32) + b3[...], 0.0)
    out_ref[...] = jax.lax.dot_general(
        h, w4t[...], (((1,), (1,)), ((), ())),
        preferred_element_type=jnp.float32) + b4[...]


def inst_mlp(z_row, params):
    (w1, b1), (w2, b2), (w3, b3), (w4t, b4) = params
    out_dim = b4.shape[1]
    # TODO(synk): if multiple collision events were evaluated per forward, all
    # z rows should be batched into one call to amortize the weight stream.
    return pl.pallas_call(
        inst_mlp_kernel,
        out_shape=jax.ShapeDtypeStruct((1, out_dim), jnp.float32),
        # ~4.5 MiB of weights + scratch; 24 MiB leaves headroom on v7x (64 MiB
        # physical VMEM) and is safe on v5e/v6e.
        compiler_params=pltpu.CompilerParams(vmem_limit_bytes=24 << 20),
    )(z_row, w1, b1, w2, b2, w3, b3, w4t, b4)


def inst_mlp_ref(z_row, params):
    (w1, b1), (w2, b2), (w3, b3), (w4t, b4) = params
    h = jnp.maximum(z_row @ w1 + b1, 0.0)
    h = jnp.maximum(jnp.dot(h.astype(jnp.bfloat16), w2,
                            preferred_element_type=jnp.float32) + b2, 0.0)
    h = jnp.maximum(jnp.dot(h.astype(jnp.bfloat16), w3,
                            preferred_element_type=jnp.float32) + b3, 0.0)
    return jax.lax.dot_general(h, w4t, (((1,), (1,)), ((), ())),
                               preferred_element_type=jnp.float32) + b4


# ----------------------------------------------------------------------------
# Parameter init (deterministic, PyTorch-nn.Linear-style uniform)
# ----------------------------------------------------------------------------
def linear_init(key, fan_in, fan_out):
    kw, kb = jax.random.split(key)
    bound = 1.0 / math.sqrt(fan_in)
    w = jax.random.uniform(kw, (fan_in, fan_out), jnp.float32, -bound, bound)
    b = jax.random.uniform(kb, (1, fan_out), jnp.float32, -bound, bound)
    return w, b


# ----------------------------------------------------------------------------
# NeuralPhysics.forward (simplified event handling, see TODO(synk) above)
# ----------------------------------------------------------------------------
def neural_physics_forward(steps, ini_pos, diameters, params, check=False):
    hmod_p, inst_p, ev_p = params
    (hw1, hb1), (hw2t, hb2) = hmod_p            # hw1: (3, H1), hw2t: (2, H1)

    dts = steps[1:] - steps[:-1]
    diam_col = diameters[:, None]
    w1p = hw1[:2, :]                            # (2, H1) pos part of W1
    w1d = hw1[2:3, :]                           # (1, H1) diameter part of W1
    bias_eff = diam_col * w1d + hb1             # (N, H1), step-invariant

    # --- hot path 1: dynamics rollout in Pallas -----------------------------
    tp, tv = rollout(dts, ini_pos, bias_eff, w1p, hw2t, hb2)
    if check:   # debug-only: forces a device->host sync
        tp_r, tv_r = rollout_ref(dts, ini_pos, bias_eff, w1p, hw2t, hb2)
        np.testing.assert_allclose(np.asarray(tp), np.asarray(tp_r),
                                   rtol=5e-3, atol=5e-3)
        np.testing.assert_allclose(np.asarray(tv), np.asarray(tv_r),
                                   rtol=5e-3, atol=5e-3)

    traj_pos = jnp.concatenate([ini_pos[None], tp], axis=0)        # (T+1, N, 2)
    traj_vel = jnp.concatenate([jnp.zeros_like(ini_pos)[None], tv], axis=0)

    # --- event bookkeeping (plain JAX glue) ----------------------------------
    # nearest(pos, m=0)
    m = 0
    d = jnp.sqrt(jnp.sum((traj_pos[-1] - traj_pos[-1][m]) ** 2, axis=-1))
    d = d.at[m].set(jnp.inf)
    n = jnp.argmin(d)
    qm, qn = jnp.minimum(m, n), jnp.maximum(m, n)
    chosen_dia = jnp.stack([jnp.take(diameters, qm), jnp.take(diameters, qn)])

    pair = jnp.stack([jnp.full((), m, jnp.int32), n.astype(jnp.int32)])
    ins_traj_pos = jnp.take(traj_pos, pair, axis=1)                # (T+1, 2, 2)
    ins_traj_vel = jnp.take(traj_vel, pair, axis=1)
    combine_pos = jnp.stack([ins_traj_pos[-1], ins_traj_pos[-2],
                             ins_traj_pos[-3]], axis=0)            # (3, 2, 2)

    # synthetic event_fn.mod latent extractor (tanh linear)  TODO(synk): hydra
    # original: z1 = cat([poses[-1].view(-1), chosen_dia]) with poses == combine_pos
    ew, eb = ev_p
    z1 = jnp.concatenate([combine_pos[-1].reshape(-1), chosen_dia])
    event_latents = jnp.tanh(z1 @ ew + eb[0])

    z2 = jnp.concatenate([event_latents,
                          combine_pos.reshape(-1),
                          ins_traj_vel[-1].reshape(-1),
                          chosen_dia ** 2])[None, :]               # (1, 26)

    # --- hot path 2: instantaneous state-change MLP in Pallas ---------------
    inst_vel_row = inst_mlp(z2, inst_p)
    if check:   # debug-only
        ref = inst_mlp_ref(z2, inst_p)
        np.testing.assert_allclose(np.asarray(inst_vel_row), np.asarray(ref),
                                   rtol=2e-3, atol=2e-3)
    inst_vel = inst_vel_row.reshape(2, 2)

    new_vel = traj_vel[-1].at[m].set(inst_vel[0]).at[n].set(inst_vel[1])
    event_times = [steps[-1]]
    return traj_pos, traj_vel, new_vel, event_times


if __name__ == "__main__":
    # Small, deterministic problem sizes implied by the module:
    N_ALL_OB = 4          # n_all_ob
    N_OBJECTS = 2         # colliding pair
    N_EVENT_LATENT = 8
    T = 8                 # number of integration steps
    H1 = 512              # hmod hidden
    H2 = 1024             # inst_update hidden

    key = jax.random.PRNGKey(0)
    k_pos, k_dia, k1, k2, k3, k4, k5, k6, k7 = jax.random.split(key, 9)

    ini_pos = jax.random.normal(k_pos, (N_ALL_OB, 2), jnp.float32)
    diameters = jax.random.uniform(k_dia, (N_ALL_OB,), jnp.float32, 0.5, 1.5)
    steps = jnp.linspace(0.0, 1.0, T + 1).astype(jnp.float32)

    # HamiltonianDynamics.hmod: Linear(3,512) ReLU Linear(512,2) Tanh
    hw1, hb1 = linear_init(k1, 3, H1)
    hw2, hb2 = linear_init(k2, H1, 2)
    hmod_params = ((hw1, hb1), (jnp.transpose(hw2), hb2))   # W2 stored (2, H1)

    # InstantaneousStateChange.net: in = 2*n_obj*3 + 2*n_obj + latent + 2 = 26
    in_dim = 2 * N_OBJECTS * 3 + 2 * N_OBJECTS + N_EVENT_LATENT + 2
    iw1, ib1 = linear_init(k3, in_dim, H2)
    iw2, ib2 = linear_init(k4, H2, H2)
    iw3, ib3 = linear_init(k5, H2, H2)
    iw4, ib4 = linear_init(k6, H2, 2 * N_OBJECTS)
    inst_params = ((iw1, ib1),
                   (iw2.astype(jnp.bfloat16), ib2),          # bf16 weight stream
                   (iw3.astype(jnp.bfloat16), ib3),          # bf16 weight stream
                   (jnp.transpose(iw4), ib4))                # W4 stored (4, H2)

    # synthetic event-latent extractor: Linear(6, n_event_latent) + tanh
    event_params = linear_init(k7, 2 * N_OBJECTS + 2, N_EVENT_LATENT)

    params = (hmod_params, inst_params, event_params)

    # Debug/correctness pass (un-jitted, compares both kernels to pure-JAX refs)
    neural_physics_forward(steps, ini_pos, diameters, params, check=True)

    # Production path: whole forward under one jit so the two pallas_calls and
    # the event-bookkeeping glue dispatch as a single XLA program.
    fwd = jax.jit(
        lambda s, p0, dia: neural_physics_forward(s, p0, dia, params, check=False))
    traj_pos, traj_vel, new_vel, event_times = fwd(steps, ini_pos, diameters)

    jax.block_until_ready((traj_pos, traj_vel, new_vel, event_times))
    assert traj_pos.shape == (T + 1, N_ALL_OB, 2)
    assert traj_vel.shape == (T + 1, N_ALL_OB, 2)
    assert new_vel.shape == (N_ALL_OB, 2)
    print("KERNEL_OK")
</pallas_src>

<mosaic_0001>
module attributes {stable_mosaic.version = 11 : i64} {
  func.func @rollout_kernel(%arg0: memref<8xf32, #tpu.memory_space<smem>>, %arg1: memref<4x2xf32, #tpu.memory_space<vmem>>, %arg2: memref<4x512xf32, #tpu.memory_space<vmem>>, %arg3: memref<2x512xf32, #tpu.memory_space<vmem>>, %arg4: memref<2x512xf32, #tpu.memory_space<vmem>>, %arg5: memref<1x2xf32, #tpu.memory_space<vmem>>, %arg6: memref<8x4x2xf32, #tpu.memory_space<vmem>>, %arg7: memref<8x4x2xf32, #tpu.memory_space<vmem>>) attributes {dimension_semantics = [], scalar_prefetch = 0 : i64, scratch_operands = 0 : i64, tpu.core_type = #tpu.core_type<tc>} {
    %c0 = arith.constant 0 : index
    %c0_0 = arith.constant 0 : index
    %0 = vector.load %arg3[%c0, %c0_0] : memref<2x512xf32, #tpu.memory_space<vmem>>, vector<1x512xf32>
    %c1 = arith.constant 1 : index
    %c0_1 = arith.constant 0 : index
    %1 = vector.load %arg3[%c1, %c0_1] : memref<2x512xf32, #tpu.memory_space<vmem>>, vector<1x512xf32>
    %c0_2 = arith.constant 0 : index
    %c0_3 = arith.constant 0 : index
    %2 = vector.load %arg2[%c0_2, %c0_3] : memref<4x512xf32, #tpu.memory_space<vmem>>, vector<4x512xf32>
    %c0_4 = arith.constant 0 : index
    %c0_5 = arith.constant 0 : index
    %3 = vector.load %arg4[%c0_4, %c0_5] : memref<2x512xf32, #tpu.memory_space<vmem>>, vector<2x512xf32>
    %c0_6 = arith.constant 0 : index
    %c0_7 = arith.constant 0 : index
    %4 = vector.load %arg5[%c0_6, %c0_7] : memref<1x2xf32, #tpu.memory_space<vmem>>, vector<1x2xf32>
    %c0_8 = arith.constant 0 : index
    %c0_9 = arith.constant 0 : index
    %5 = vector.load %arg1[%c0_8, %c0_9] : memref<4x2xf32, #tpu.memory_space<vmem>>, vector<4x2xf32>
    %cst = arith.constant 0.000000e+00 : f32
    %6 = vector.broadcast %cst : f32 to vector<4x2xf32>
    %c0_10 = arith.constant 0 : index
    %7 = memref.load %arg0[%c0_10] : memref<8xf32, #tpu.memory_space<smem>>
    %8 = vector.extract_strided_slice %5 {offsets = [0, 0], sizes = [4, 1], strides = [1, 1]} : vector<4x2xf32> to vector<4x1xf32>
    %9 = vector.broadcast %8 : vector<4x1xf32> to vector<4x512xf32>
    %10 = vector.broadcast %0 : vector<1x512xf32> to vector<4x512xf32>
    %11 = arith.mulf %9, %10 : vector<4x512xf32>
    %12 = vector.extract_strided_slice %5 {offsets = [0, 1], sizes = [4, 1], strides = [1, 1]} : vector<4x2xf32> to vector<4x1xf32>
    %13 = vector.broadcast %12 : vector<4x1xf32> to vector<4x512xf32>
    %14 = vector.broadcast %1 : vector<1x512xf32> to vector<4x512xf32>
    %15 = arith.mulf %13, %14 : vector<4x512xf32>
    %16 = arith.addf %11, %15 : vector<4x512xf32>
    %17 = arith.addf %16, %2 : vector<4x512xf32>
    %cst_11 = arith.constant 0.000000e+00 : f32
    %18 = vector.broadcast %cst_11 : f32 to vector<4x512xf32>
    %19 = arith.maximumf %17, %18 : vector<4x512xf32>
    %cst_12 = arith.constant dense<0.000000e+00> : vector<4x2xf32>
    %20 = tpu.matmul %19, %3, %cst_12 {dimension_numbers = #tpu.dot_dimension_numbers<[1], [1], [0], [0], [0, 0, 1, 0], [], []>} : vector<4x512xf32>, vector<2x512xf32>, vector<4x2xf32> -> vector<4x2xf32>
    %21 = vector.broadcast %4 : vector<1x2xf32> to vector<4x2xf32>
    %22 = arith.addf %20, %21 : vector<4x2xf32>
    %23 = math.tanh %22 : vector<4x2xf32>
    %24 = vector.broadcast %7 : f32 to vector<4x2xf32>
    %25 = arith.mulf %24, %6 : vector<4x2xf32>
    %26 = arith.addf %5, %25 : vector<4x2xf32>
    %27 = vector.broadcast %7 : f32 to vector<4x2xf32>
    %28 = arith.mulf %27, %23 : vector<4x2xf32>
    %29 = arith.subf %6, %28 : vector<4x2xf32>
    %c0_13 = arith.constant 0 : index
    %c0_14 = arith.constant 0 : index
    %c0_15 = arith.constant 0 : index
    %30 = vector.load %arg6[%c0_13, %c0_14, %c0_15] : memref<8x4x2xf32, #tpu.memory_space<vmem>>, vector<1x4x2xf32>
    %31 = vector.shape_cast %30 : vector<1x4x2xf32> to vector<4x2xf32>
    %32 = vector.shape_cast %26 : vector<4x2xf32> to vector<1x4x2xf32>
    tpu.vector_store %arg6[%c0_13, %c0_14, %c0_15], %32 {strides = array<i32>} : memref<8x4x2xf32, #tpu.memory_space<vmem>>, vector<1x4x2xf32>,
    %c0_16 = arith.constant 0 : index
    %c0_17 = arith.constant 0 : index
    %c0_18 = arith.constant 0 : index
    %33 = vector.load %arg7[%c0_16, %c0_17, %c0_18] : memref<8x4x2xf32, #tpu.memory_space<vmem>>, vector<1x4x2xf32>
    %34 = vector.shape_cast %33 : vector<1x4x2xf32> to vector<4x2xf32>
    %35 = vector.shape_cast %29 : vector<4x2xf32> to vector<1x4x2xf32>
    tpu.vector_store %arg7[%c0_16, %c0_17, %c0_18], %35 {strides = array<i32>} : memref<8x4x2xf32, #tpu.memory_space<vmem>>, vector<1x4x2xf32>,
    %c1_19 = arith.constant 1 : index
    %36 = memref.load %arg0[%c1_19] : memref<8xf32, #tpu.memory_space<smem>>
    %37 = vector.extract_strided_slice %26 {offsets = [0, 0], sizes = [4, 1], strides = [1, 1]} : vector<4x2xf32> to vector<4x1xf32>
    %38 = vector.broadcast %37 : vector<4x1xf32> to vector<4x512xf32>
    %39 = vector.broadcast %0 : vector<1x512xf32> to vector<4x512xf32>
    %40 = arith.mulf %38, %39 : vector<4x512xf32>
    %41 = vector.extract_strided_slice %26 {offsets = [0, 1], sizes = [4, 1], strides = [1, 1]} : vector<4x2xf32> to vector<4x1xf32>
    %42 = vector.broadcast %41 : vector<4x1xf32> to vector<4x512xf32>
    %43 = vector.broadcast %1 : vector<1x512xf32> to vector<4x512xf32>
    %44 = arith.mulf %42, %43 : vector<4x512xf32>
    %45 = arith.addf %40, %44 : vector<4x512xf32>
    %46 = arith.addf %45, %2 : vector<4x512xf32>
    %cst_20 = arith.constant 0.000000e+00 : f32
    %47 = vector.broadcast %cst_20 : f32 to vector<4x512xf32>
    %48 = arith.maximumf %46, %47 : vector<4x512xf32>
    %cst_21 = arith.constant dense<0.000000e+00> : vector<4x2xf32>
    %49 = tpu.matmul %48, %3, %cst_21 {dimension_numbers = #tpu.dot_dimension_numbers<[1], [1], [0], [0], [0, 0, 1, 0], [], []>} : vector<4x512xf32>, vector<2x512xf32>, vector<4x2xf32> -> vector<4x2xf32>
    %50 = vector.broadcast %4 : vector<1x2xf32> to vector<4x2xf32>
    %51 = arith.addf %49, %50 : vector<4x2xf32>
    %52 = math.tanh %51 : vector<4x2xf32>
    %53 = vector.broadcast %36 : f32 to vector<4x2xf32>
    %54 = arith.mulf %53, %29 : vector<4x2xf32>
    %55 = arith.addf %26, %54 : vector<4x2xf32>
    %56 = vector.broadcast %36 : f32 to vector<4x2xf32>
    %57 = arith.mulf %56, %52 : vector<4x2xf32>
    %58 = arith.subf %29, %57 : vector<4x2xf32>
    %c1_22 = arith.constant 1 : index
    %c0_23 = arith.constant 0 : index
    %c0_24 = arith.constant 0 : index
    %59 = vector.load %arg6[%c1_22, %c0_23, %c0_24] : memref<8x4x2xf32, #tpu.memory_space<vmem>>, vector<1x4x2xf32>
    %60 = vector.shape_cast %59 : vector<1x4x2xf32> to vector<4x2xf32>
    %61 = vector.shape_cast %55 : vector<4x2xf32> to vector<1x4x2xf32>
    tpu.vector_store %arg6[%c1_22, %c0_23, %c0_24], %61 {strides = array<i32>} : memref<8x4x2xf32, #tpu.memory_space<vmem>>, vector<1x4x2xf32>,
    %c1_25 = arith.constant 1 : index
    %c0_26 = arith.constant 0 : index
    %c0_27 = arith.constant 0 : index
    %62 = vector.load %arg7[%c1_25, %c0_26, %c0_27] : memref<8x4x2xf32, #tpu.memory_space<vmem>>, vector<1x4x2xf32>
    %63 = vector.shape_cast %62 : vector<1x4x2xf32> to vector<4x2xf32>
    %64 = vector.shape_cast %58 : vector<4x2xf32> to vector<1x4x2xf32>
    tpu.vector_store %arg7[%c1_25, %c0_26, %c0_27], %64 {strides = array<i32>} : memref<8x4x2xf32, #tpu.memory_space<vmem>>, vector<1x4x2xf32>,
    %c2 = arith.constant 2 : index
    %65 = memref.load %arg0[%c2] : memref<8xf32, #tpu.memory_space<smem>>
    %66 = vector.extract_strided_slice %55 {offsets = [0, 0], sizes = [4, 1], strides = [1, 1]} : vector<4x2xf32> to vector<4x1xf32>
    %67 = vector.broadcast %66 : vector<4x1xf32> to vector<4x512xf32>
    %68 = vector.broadcast %0 : vector<1x512xf32> to vector<4x512xf32>
    %69 = arith.mulf %67, %68 : vector<4x512xf32>
    %70 = vector.extract_strided_slice %55 {offsets = [0, 1], sizes = [4, 1], strides = [1, 1]} : vector<4x2xf32> to vector<4x1xf32>
    %71 = vector.broadcast %70 : vector<4x1xf32> to vector<4x512xf32>
    %72 = vector.broadcast %1 : vector<1x512xf32> to vector<4x512xf32>
    %73 = arith.mulf %71, %72 : vector<4x512xf32>
    %74 = arith.addf %69, %73 : vector<4x512xf32>
    %75 = arith.addf %74, %2 : vector<4x512xf32>
    %cst_28 = arith.constant 0.000000e+00 : f32
    %76 = vector.broadcast %cst_28 : f32 to vector<4x512xf32>
    %77 = arith.maximumf %75, %76 : vector<4x512xf32>
    %cst_29 = arith.constant dense<0.000000e+00> : vector<4x2xf32>
    %78 = tpu.matmul %77, %3, %cst_29 {dimension_numbers = #tpu.dot_dimension_numbers<[1], [1], [0], [0], [0, 0, 1, 0], [], []>} : vector<4x512xf32>, vector<2x512xf32>, vector<4x2xf32> -> vector<4x2xf32>
    %79 = vector.broadcast %4 : vector<1x2xf32> to vector<4x2xf32>
    %80 = arith.addf %78, %79 : vector<4x2xf32>
    %81 = math.tanh %80 : vector<4x2xf32>
    %82 = vector.broadcast %65 : f32 to vector<4x2xf32>
    %83 = arith.mulf %82, %58 : vector<4x2xf32>
    %84 = arith.addf %55, %83 : vector<4x2xf32>
    %85 = vector.broadcast %65 : f32 to vector<4x2xf32>
    %86 = arith.mulf %85, %81 : vector<4x2xf32>
    %87 = arith.subf %58, %86 : vector<4x2xf32>
    %c2_30 = arith.constant 2 : index
    %c0_31 = arith.constant 0 : index
    %c0_32 = arith.constant 0 : index
    %88 = vector.load %arg6[%c2_30, %c0_31, %c0_32] : memref<8x4x2xf32, #tpu.memory_space<vmem>>, vector<1x4x2xf32>
    %89 = vector.shape_cast %88 : vector<1x4x2xf32> to vector<4x2xf32>
    %90 = vector.shape_cast %84 : vector<4x2xf32> to vector<1x4x2xf32>
    tpu.vector_store %arg6[%c2_30, %c0_31, %c0_32], %90 {strides = array<i32>} : memref<8x4x2xf32, #tpu.memory_space<vmem>>, vector<1x4x2xf32>,
    %c2_33 = arith.constant 2 : index
    %c0_34 = arith.constant 0 : index
    %c0_35 = arith.constant 0 : index
    %91 = vector.load %arg7[%c2_33, %c0_34, %c0_35] : memref<8x4x2xf32, #tpu.memory_space<vmem>>, vector<1x4x2xf32>
    %92 = vector.shape_cast %91 : vector<1x4x2xf32> to vector<4x2xf32>
    %93 = vector.shape_cast %87 : vector<4x2xf32> to vector<1x4x2xf32>
    tpu.vector_store %arg7[%c2_33, %c0_34, %c0_35], %93 {strides = array<i32>} : memref<8x4x2xf32, #tpu.memory_space<vmem>>, vector<1x4x2xf32>,
    %c3 = arith.constant 3 : index
    %94 = memref.load %arg0[%c3] : memref<8xf32, #tpu.memory_space<smem>>
    %95 = vector.extract_strided_slice %84 {offsets = [0, 0], sizes = [4, 1], strides = [1, 1]} : vector<4x2xf32> to vector<4x1xf32>
    %96 = vector.broadcast %95 : vector<4x1xf32> to vector<4x512xf32>
    %97 = vector.broadcast %0 : vector<1x512xf32> to vector<4x512xf32>
    %98 = arith.mulf %96, %97 : vector<4x512xf32>
    %99 = vector.extract_strided_slice %84 {offsets = [0, 1], sizes = [4, 1], strides = [1, 1]} : vector<4x2xf32> to vector<4x1xf32>
    %100 = vector.broadcast %99 : vector<4x1xf32> to vector<4x512xf32>
    %101 = vector.broadcast %1 : vector<1x512xf32> to vector<4x512xf32>
    %102 = arith.mulf %100, %101 : vector<4x512xf32>
    %103 = arith.addf %98, %102 : vector<4x512xf32>
    %104 = arith.addf %103, %2 : vector<4x512xf32>
    %cst_36 = arith.constant 0.000000e+00 : f32
    %105 = vector.broadcast %cst_36 : f32 to vector<4x512xf32>
    %106 = arith.maximumf %104, %105 : vector<4x512xf32>
    %cst_37 = arith.constant dense<0.000000e+00> : vector<4x2xf32>
    %107 = tpu.matmul %106, %3, %cst_37 {dimension_numbers = #tpu.dot_dimension_numbers<[1], [1], [0], [0], [0, 0, 1, 0], [], []>} : vector<4x512xf32>, vector<2x512xf32>, vector<4x2xf32> -> vector<4x2xf32>
    %108 = vector.broadcast %4 : vector<1x2xf32> to vector<4x2xf32>
    %109 = arith.addf %107, %108 : vector<4x2xf32>
    %110 = math.tanh %109 : vector<4x2xf32>
    %111 = vector.broadcast %94 : f32 to vector<4x2xf32>
    %112 = arith.mulf %111, %87 : vector<4x2xf32>
    %113 = arith.addf %84, %112 : vector<4x2xf32>
    %114 = vector.broadcast %94 : f32 to vector<4x2xf32>
    %115 = arith.mulf %114, %110 : vector<4x2xf32>
    %116 = arith.subf %87, %115 : vector<4x2xf32>
    %c3_38 = arith.constant 3 : index
    %c0_39 = arith.constant 0 : index
    %c0_40 = arith.constant 0 : index
    %117 = vector.load %arg6[%c3_38, %c0_39, %c0_40] : memref<8x4x2xf32, #tpu.memory_space<vmem>>, vector<1x4x2xf32>
    %118 = vector.shape_cast %117 : vector<1x4x2xf32> to vector<4x2xf32>
    %119 = vector.shape_cast %113 : vector<4x2xf32> to vector<1x4x2xf32>
    tpu.vector_store %arg6[%c3_38, %c0_39, %c0_40], %119 {strides = array<i32>} : memref<8x4x2xf32, #tpu.memory_space<vmem>>, vector<1x4x2xf32>,
    %c3_41 = arith.constant 3 : index
    %c0_42 = arith.constant 0 : index
    %c0_43 = arith.constant 0 : index
    %120 = vector.load %arg7[%c3_41, %c0_42, %c0_43] : memref<8x4x2xf32, #tpu.memory_space<vmem>>, vector<1x4x2xf32>
    %121 = vector.shape_cast %120 : vector<1x4x2xf32> to vector<4x2xf32>
    %122 = vector.shape_cast %116 : vector<4x2xf32> to vector<1x4x2xf32>
    tpu.vector_store %arg7[%c3_41, %c0_42, %c0_43], %122 {strides = array<i32>} : memref<8x4x2xf32, #tpu.memory_space<vmem>>, vector<1x4x2xf32>,
    %c4 = arith.constant 4 : index
    %123 = memref.load %arg0[%c4] : memref<8xf32, #tpu.memory_space<smem>>
    %124 = vector.extract_strided_slice %113 {offsets = [0, 0], sizes = [4, 1], strides = [1, 1]} : vector<4x2xf32> to vector<4x1xf32>
    %125 = vector.broadcast %124 : vector<4x1xf32> to vector<4x512xf32>
    %126 = vector.broadcast %0 : vector<1x512xf32> to vector<4x512xf32>
    %127 = arith.mulf %125, %126 : vector<4x512xf32>
    %128 = vector.extract_strided_slice %113 {offsets = [0, 1], sizes = [4, 1], strides = [1, 1]} : vector<4x2xf32> to vector<4x1xf32>
    %129 = vector.broadcast %128 : vector<4x1xf32> to vector<4x512xf32>
    %130 = vector.broadcast %1 : vector<1x512xf32> to vector<4x512xf32>
    %131 = arith.mulf %129, %130 : vector<4x512xf32>
    %132 = arith.addf %127, %131 : vector<4x512xf32>
    %133 = arith.addf %132, %2 : vector<4x512xf32>
    %cst_44 = arith.constant 0.000000e+00 : f32
    %134 = vector.broadcast %cst_44 : f32 to vector<4x512xf32>
    %135 = arith.maximumf %133, %134 : vector<4x512xf32>
    %cst_45 = arith.constant dense<0.000000e+00> : vector<4x2xf32>
    %136 = tpu.matmul %135, %3, %cst_45 {dimension_numbers = #tpu.dot_dimension_numbers<[1], [1], [0], [0], [0, 0, 1, 0], [], []>} : vector<4x512xf32>, vector<2x512xf32>, vector<4x2xf32> -> vector<4x2xf32>
    %137 = vector.broadcast %4 : vector<1x2xf32> to vector<4x2xf32>
    %138 = arith.addf %136, %137 : vector<4x2xf32>
    %139 = math.tanh %138 : vector<4x2xf32>
    %140 = vector.broadcast %123 : f32 to vector<4x2xf32>
    %141 = arith.mulf %140, %116 : vector<4x2xf32>
    %142 = arith.addf %113, %141 : vector<4x2xf32>
    %143 = vector.broadcast %123 : f32 to vector<4x2xf32>
    %144 = arith.mulf %143, %139 : vector<4x2xf32>
    %145 = arith.subf %116, %144 : vector<4x2xf32>
    %c4_46 = arith.constant 4 : index
    %c0_47 = arith.constant 0 : index
    %c0_48 = arith.constant 0 : index
    %146 = vector.load %arg6[%c4_46, %c0_47, %c0_48] : memref<8x4x2xf32, #tpu.memory_space<vmem>>, vector<1x4x2xf32>
    %147 = vector.shape_cast %146 : vector<1x4x2xf32> to vector<4x2xf32>
    %148 = vector.shape_cast %142 : vector<4x2xf32> to vector<1x4x2xf32>
    tpu.vector_store %arg6[%c4_46, %c0_47, %c0_48], %148 {strides = array<i32>} : memref<8x4x2xf32, #tpu.memory_space<vmem>>, vector<1x4x2xf32>,
    %c4_49 = arith.constant 4 : index
    %c0_50 = arith.constant 0 : index
    %c0_51 = arith.constant 0 : index
    %149 = vector.load %arg7[%c4_49, %c0_50, %c0_51] : memref<8x4x2xf32, #tpu.memory_space<vmem>>, vector<1x4x2xf32>
    %150 = vector.shape_cast %149 : vector<1x4x2xf32> to vector<4x2xf32>
    %151 = vector.shape_cast %145 : vector<4x2xf32> to vector<1x4x2xf32>
    tpu.vector_store %arg7[%c4_49, %c0_50, %c0_51], %151 {strides = array<i32>} : memref<8x4x2xf32, #tpu.memory_space<vmem>>, vector<1x4x2xf32>,
    %c5 = arith.constant 5 : index
    %152 = memref.load %arg0[%c5] : memref<8xf32, #tpu.memory_space<smem>>
    %153 = vector.extract_strided_slice %142 {offsets = [0, 0], sizes = [4, 1], strides = [1, 1]} : vector<4x2xf32> to vector<4x1xf32>
    %154 = vector.broadcast %153 : vector<4x1xf32> to vector<4x512xf32>
    %155 = vector.broadcast %0 : vector<1x512xf32> to vector<4x512xf32>
    %156 = arith.mulf %154, %155 : vector<4x512xf32>
    %157 = vector.extract_strided_slice %142 {offsets = [0, 1], sizes = [4, 1], strides = [1, 1]} : vector<4x2xf32> to vector<4x1xf32>
    %158 = vector.broadcast %157 : vector<4x1xf32> to vector<4x512xf32>
    %159 = vector.broadcast %1 : vector<1x512xf32> to vector<4x512xf32>
    %160 = arith.mulf %158, %159 : vector<4x512xf32>
    %161 = arith.addf %156, %160 : vector<4x512xf32>
    %162 = arith.addf %161, %2 : vector<4x512xf32>
    %cst_52 = arith.constant 0.000000e+00 : f32
    %163 = vector.broadcast %cst_52 : f32 to vector<4x512xf32>
    %164 = arith.maximumf %162, %163 : vector<4x512xf32>
    %cst_53 = arith.constant dense<0.000000e+00> : vector<4x2xf32>
    %165 = tpu.matmul %164, %3, %cst_53 {dimension_numbers = #tpu.dot_dimension_numbers<[1], [1], [0], [0], [0, 0, 1, 0], [], []>} : vector<4x512xf32>, vector<2x512xf32>, vector<4x2xf32> -> vector<4x2xf32>
    %166 = vector.broadcast %4 : vector<1x2xf32> to vector<4x2xf32>
    %167 = arith.addf %165, %166 : vector<4x2xf32>
    %168 = math.tanh %167 : vector<4x2xf32>
    %169 = vector.broadcast %152 : f32 to vector<4x2xf32>
    %170 = arith.mulf %169, %145 : vector<4x2xf32>
    %171 = arith.addf %142, %170 : vector<4x2xf32>
    %172 = vector.broadcast %152 : f32 to vector<4x2xf32>
    %173 = arith.mulf %172, %168 : vector<4x2xf32>
    %174 = arith.subf %145, %173 : vector<4x2xf32>
    %c5_54 = arith.constant 5 : index
    %c0_55 = arith.constant 0 : index
    %c0_56 = arith.constant 0 : index
    %175 = vector.load %arg6[%c5_54, %c0_55, %c0_56] : memref<8x4x2xf32, #tpu.memory_space<vmem>>, vector<1x4x2xf32>
    %176 = vector.shape_cast %175 : vector<1x4x2xf32> to vector<4x2xf32>
    %177 = vector.shape_cast %171 : vector<4x2xf32> to vector<1x4x2xf32>
    tpu.vector_store %arg6[%c5_54, %c0_55, %c0_56], %177 {strides = array<i32>} : memref<8x4x2xf32, #tpu.memory_space<vmem>>, vector<1x4x2xf32>,
    %c5_57 = arith.constant 5 : index
    %c0_58 = arith.constant 0 : index
    %c0_59 = arith.constant 0 : index
    %178 = vector.load %arg7[%c5_57, %c0_58, %c0_59] : memref<8x4x2xf32, #tpu.memory_space<vmem>>, vector<1x4x2xf32>
    %179 = vector.shape_cast %178 : vector<1x4x2xf32> to vector<4x2xf32>
    %180 = vector.shape_cast %174 : vector<4x2xf32> to vector<1x4x2xf32>
    tpu.vector_store %arg7[%c5_57, %c0_58, %c0_59], %180 {strides = array<i32>} : memref<8x4x2xf32, #tpu.memory_space<vmem>>, vector<1x4x2xf32>,
    %c6 = arith.constant 6 : index
    %181 = memref.load %arg0[%c6] : memref<8xf32, #tpu.memory_space<smem>>
    %182 = vector.extract_strided_slice %171 {offsets = [0, 0], sizes = [4, 1], strides = [1, 1]} : vector<4x2xf32> to vector<4x1xf32>
    %183 = vector.broadcast %182 : vector<4x1xf32> to vector<4x512xf32>
    %184 = vector.broadcast %0 : vector<1x512xf32> to vector<4x512xf32>
    %185 = arith.mulf %183, %184 : vector<4x512xf32>
    %186 = vector.extract_strided_slice %171 {offsets = [0, 1], sizes = [4, 1], strides = [1, 1]} : vector<4x2xf32> to vector<4x1xf32>
    %187 = vector.broadcast %186 : vector<4x1xf32> to vector<4x512xf32>
    %188 = vector.broadcast %1 : vector<1x512xf32> to vector<4x512xf32>
    %189 = arith.mulf %187, %188 : vector<4x512xf32>
    %190 = arith.addf %185, %189 : vector<4x512xf32>
    %191 = arith.addf %190, %2 : vector<4x512xf32>
    %cst_60 = arith.constant 0.000000e+00 : f32
    %192 = vector.broadcast %cst_60 : f32 to vector<4x512xf32>
    %193 = arith.maximumf %191, %192 : vector<4x512xf32>
    %cst_61 = arith.constant dense<0.000000e+00> : vector<4x2xf32>
    %194 = tpu.matmul %193, %3, %cst_61 {dimension_numbers = #tpu.dot_dimension_numbers<[1], [1], [0], [0], [0, 0, 1, 0], [], []>} : vector<4x512xf32>, vector<2x512xf32>, vector<4x2xf32> -> vector<4x2xf32>
    %195 = vector.broadcast %4 : vector<1x2xf32> to vector<4x2xf32>
    %196 = arith.addf %194, %195 : vector<4x2xf32>
    %197 = math.tanh %196 : vector<4x2xf32>
    %198 = vector.broadcast %181 : f32 to vector<4x2xf32>
    %199 = arith.mulf %198, %174 : vector<4x2xf32>
    %200 = arith.addf %171, %199 : vector<4x2xf32>
    %201 = vector.broadcast %181 : f32 to vector<4x2xf32>
    %202 = arith.mulf %201, %197 : vector<4x2xf32>
    %203 = arith.subf %174, %202 : vector<4x2xf32>
    %c6_62 = arith.constant 6 : index
    %c0_63 = arith.constant 0 : index
    %c0_64 = arith.constant 0 : index
    %204 = vector.load %arg6[%c6_62, %c0_63, %c0_64] : memref<8x4x2xf32, #tpu.memory_space<vmem>>, vector<1x4x2xf32>
    %205 = vector.shape_cast %204 : vector<1x4x2xf32> to vector<4x2xf32>
    %206 = vector.shape_cast %200 : vector<4x2xf32> to vector<1x4x2xf32>
    tpu.vector_store %arg6[%c6_62, %c0_63, %c0_64], %206 {strides = array<i32>} : memref<8x4x2xf32, #tpu.memory_space<vmem>>, vector<1x4x2xf32>,
    %c6_65 = arith.constant 6 : index
    %c0_66 = arith.constant 0 : index
    %c0_67 = arith.constant 0 : index
    %207 = vector.load %arg7[%c6_65, %c0_66, %c0_67] : memref<8x4x2xf32, #tpu.memory_space<vmem>>, vector<1x4x2xf32>
    %208 = vector.shape_cast %207 : vector<1x4x2xf32> to vector<4x2xf32>
    %209 = vector.shape_cast %203 : vector<4x2xf32> to vector<1x4x2xf32>
    tpu.vector_store %arg7[%c6_65, %c0_66, %c0_67], %209 {strides = array<i32>} : memref<8x4x2xf32, #tpu.memory_space<vmem>>, vector<1x4x2xf32>,
    %c7 = arith.constant 7 : index
    %210 = memref.load %arg0[%c7] : memref<8xf32, #tpu.memory_space<smem>>
    %211 = vector.extract_strided_slice %200 {offsets = [0, 0], sizes = [4, 1], strides = [1, 1]} : vector<4x2xf32> to vector<4x1xf32>
    %212 = vector.broadcast %211 : vector<4x1xf32> to vector<4x512xf32>
    %213 = vector.broadcast %0 : vector<1x512xf32> to vector<4x512xf32>
    %214 = arith.mulf %212, %213 : vector<4x512xf32>
    %215 = vector.extract_strided_slice %200 {offsets = [0, 1], sizes = [4, 1], strides = [1, 1]} : vector<4x2xf32> to vector<4x1xf32>
    %216 = vector.broadcast %215 : vector<4x1xf32> to vector<4x512xf32>
    %217 = vector.broadcast %1 : vector<1x512xf32> to vector<4x512xf32>
    %218 = arith.mulf %216, %217 : vector<4x512xf32>
    %219 = arith.addf %214, %218 : vector<4x512xf32>
    %220 = arith.addf %219, %2 : vector<4x512xf32>
    %cst_68 = arith.constant 0.000000e+00 : f32
    %221 = vector.broadcast %cst_68 : f32 to vector<4x512xf32>
    %222 = arith.maximumf %220, %221 : vector<4x512xf32>
    %cst_69 = arith.constant dense<0.000000e+00> : vector<4x2xf32>
    %223 = tpu.matmul %222, %3, %cst_69 {dimension_numbers = #tpu.dot_dimension_numbers<[1], [1], [0], [0], [0, 0, 1, 0], [], []>} : vector<4x512xf32>, vector<2x512xf32>, vector<4x2xf32> -> vector<4x2xf32>
    %224 = vector.broadcast %4 : vector<1x2xf32> to vector<4x2xf32>
    %225 = arith.addf %223, %224 : vector<4x2xf32>
    %226 = math.tanh %225 : vector<4x2xf32>
    %227 = vector.broadcast %210 : f32 to vector<4x2xf32>
    %228 = arith.mulf %227, %203 : vector<4x2xf32>
    %229 = arith.addf %200, %228 : vector<4x2xf32>
    %230 = vector.broadcast %210 : f32 to vector<4x2xf32>
    %231 = arith.mulf %230, %226 : vector<4x2xf32>
    %232 = arith.subf %203, %231 : vector<4x2xf32>
    %c7_70 = arith.constant 7 : index
    %c0_71 = arith.constant 0 : index
    %c0_72 = arith.constant 0 : index
    %233 = vector.load %arg6[%c7_70, %c0_71, %c0_72] : memref<8x4x2xf32, #tpu.memory_space<vmem>>, vector<1x4x2xf32>
    %234 = vector.shape_cast %233 : vector<1x4x2xf32> to vector<4x2xf32>
    %235 = vector.shape_cast %229 : vector<4x2xf32> to vector<1x4x2xf32>
    tpu.vector_store %arg6[%c7_70, %c0_71, %c0_72], %235 {strides = array<i32>} : memref<8x4x2xf32, #tpu.memory_space<vmem>>, vector<1x4x2xf32>,
    %c7_73 = arith.constant 7 : index
    %c0_74 = arith.constant 0 : index
    %c0_75 = arith.constant 0 : index
    %236 = vector.load %arg7[%c7_73, %c0_74, %c0_75] : memref<8x4x2xf32, #tpu.memory_space<vmem>>, vector<1x4x2xf32>
    %237 = vector.shape_cast %236 : vector<1x4x2xf32> to vector<4x2xf32>
    %238 = vector.shape_cast %232 : vector<4x2xf32> to vector<1x4x2xf32>
    tpu.vector_store %arg7[%c7_73, %c0_74, %c0_75], %238 {strides = array<i32>} : memref<8x4x2xf32, #tpu.memory_space<vmem>>, vector<1x4x2xf32>,
    return
  }
}

</mosaic_0001>

<bundles_post_ra>
// kernel: tpu_custom_call.1
= control target key start
LH: loop header
LB: loop body
LE: loop exit
PB: predicated region body
PF: predicated region fallthrough
CT: control target
= control target key end

     0   :  { %13 = vsyncpa [#allocation4], 0  ;;  %s2083_s0 = inlined_call_operand.vmem [shape: f32[8], index: 0, kind: input, shape index: {}]   ;;  %s2084_s1 = inlined_call_operand.vmem [shape: f32[4,2], index: 1, kind: input, shape index: {}]   ;;  %s2085_s2 = inlined_call_operand.hbm [shape: f32[4,512], index: 2, kind: input, shape index: {}]   ;;  %s2086_s3 = inlined_call_operand.vmem [shape: f32[2,512], index: 3, kind: input, shape index: {}]   ;;  %s2087_s4 = inlined_call_operand.hbm [shape: f32[2,512], index: 4, kind: input, shape index: {}]   ;;  %s2088_s5 = inlined_call_operand.vmem [shape: f32[1,2], index: 5, kind: input, shape index: {}]   ;;  %s2089_s6 = inlined_call_operand.vmem [shape: f32[8,4,2], index: 6, kind: output, shape index: {0}]   ;;  %s2090_s7 = inlined_call_operand.vmem [shape: f32[8,4,2], index: 7, kind: output, shape index: {1}]  }
   0x1   :  { %14 = vsyncpa [#allocation3], 0  ;;  %s22_s26 = sshll.u32 %s2083_s0, 4  ;;  %s23_s26 = int_to_ptr.vmem [resolvable:$true] %s22_s26 }
   0x2   :  { %15 = vsyncpa [#allocation7], 0  ;;  %s1649_s27 = scalar_lea.vmem %s23_s26, 16  ;;  %p1654_p1 = scmp.lt.s32.totalorder %s23_s26, %s23_s26 }
   0x3   :  { %p1650_p0 = scmp.ne.s32.totalorder %s23_s26, %s1649_s27  ;;  %p1655_p2 = scmp.lt.s32.totalorder %s1649_s27, %s1649_s27 }
   0x5   :  { %p1656_p3 = por %p1655_p2, %p1654_p1 }
   0x7   :  { %p1657_p4 = pnand %p1656_p3, %p1650_p0 }
   0x9   :  { %1660 = shalt.err (!%p1657_p4)
}
   0xa   :  { %s1707_s28 = smov [#allocation2]   ;;  %s1708_s29 = smov [#allocation5]  }
   0xb   :  { %25 = dma.vmem_to_smem %s23_s26, 16, %s1707_s28, [#allocation4]  }
   0xc   :  { %s34_s30 = sshll.u32 %s1708_s29, 4  ;;  %s1709_s8 = smov [#allocation6]   ;;  %s35_s30 = int_to_ptr.vmem [resolvable:$true] %s34_s30 }
   0xd   :  { %s46_s9 = sshll.u32 %s1709_s8, 4  ;;  %s1669_s10 = scalar_lea.vmem %s35_s30, 256  ;;  %s47_s9 = int_to_ptr.vmem [resolvable:$true] %s46_s9 }
   0xe   :  { %p1670_p5 = scmp.ne.s32.totalorder %s35_s30, %s1669_s10  ;;  %p1674_p6 = scmp.lt.s32.totalorder %s35_s30, %s35_s30 }
   0xf   :  { %p1675_p7 = scmp.lt.s32.totalorder %s1669_s10, %s1669_s10 }
  0x11   :  { %p1676_p8 = por %p1675_p7, %p1674_p6 }
  0x13   :  { %p1677_p9 = pnand %p1676_p8, %p1670_p5 }
  0x15   :  { %1680 = shalt.err (!%p1677_p9)
}
  0x16   :  { %37 = dma.hbm_to_vmem [thread:$0]  %s2085_s2, 256, %s35_s30, [#allocation3]  }
  0x17   :  { %s1689_s12 = scalar_lea.vmem %s47_s9, 128  ;;  %p1694_p11 = scmp.lt.s32.totalorder %s47_s9, %s47_s9 }
  0x18   :  { %p1690_p10 = scmp.ne.s32.totalorder %s47_s9, %s1689_s12  ;;  %p1695_p12 = scmp.lt.s32.totalorder %s1689_s12, %s1689_s12 }
  0x1a   :  { %p1696_p13 = por %p1695_p12, %p1694_p11 }
  0x1c   :  { %p1697_p0 = pnand %p1696_p13, %p1690_p10 }
  0x1e   :  { %1700 = shalt.err (!%p1697_p0)
}
  0x1f   :  { %49 = dma.hbm_to_vmem [thread:$0]  %s2087_s4, 128, %s47_s9, [#allocation7]  }
  0x20   :  { %1701 = dma.done.wait [#allocation4], 16  }
  0x21   :  { %1702 = vsyncadd [#allocation4], 4294967280 }
  0x22   :  { %1703 = dma.done.wait [#allocation3], 256  }
  0x23   :  { %1704 = vsyncadd [#allocation3], 4294967040 }
  0x24   :  { %1705 = dma.done.wait [#allocation7], 128  }
  0x25   :  { %1706 = vsyncadd [#allocation7], 4294967168 }
  0x26   :  { %61 = sfence }
  0x27   :  { %v69_v0 = vld [vmem:[%s2084_s1] sm:$0xf]  ;;  %s1765_s16 = sld [smem:[#allocation2]]  ;;  %v77_v1 = vlaneseq  ;;  %v1710_v2 = vmov 0   ;;  %v1711_v3 = vmov 1983009808  }
  0x28   :  { %1625 = vset.pattern.permute.xlu0 %v1710_v2  ;;  %1627 = vset.pattern.permute.xlu1 %v1710_v2  ;;  %v157_v4 = vunpack.c.l.s4 %v1711_v3  ;;  %v67_v5 = vld [vmem:[#allocation6] sm:$0xff]  ;;  %v1712_v10 = vmov 1   ;;  %vm322_vm0 = vcmask 11264   ;;  %v62_v22 = vld [vmem:[%s2086_s3] ss:$2 sm:$0xf] }
  0x29   :  { %73 = vperm.xlu0 %1625, %v69_v0   ;;  %v78_v6 = vshrl.u32 %v77_v1, 7  ;;  %v155_v8 = vcombine.high %v67_v5, %v67_v5  ;;  %v1596_v23 = vld [vmem:[%s2086_s3 + $0x1] ss:$2 sm:$0xf]  ;;  %v1824_v37 = vld [vmem:[#allocation5 + $0x8] sm:$0xff]  ;;  %s1598_s22 = sld [smem:[#allocation2 + $0x1]] }
  0x2a   :  { %v158_v7 = vunpack.c.0.s8 %v157_v4  ;;  %v1821_v35 = vld [vmem:[#allocation5] sm:$0xff]  ;;  %v1837_v45 = vcombine.high %v1824_v37, %v1824_v37  ;;  %s1604_s8 = sld [smem:[#allocation2 + $0x3]] }
  0x2b   :  { %v79_v18 = vsub.s32 0, %v78_v6  ;;  %v87_v19 = vsub.s32 2, %v78_v6  ;;  %v83_v20 = vsub.s32 1, %v78_v6  ;;  %v91_v21 = vsub.s32 3, %v78_v6  ;;  %s1939_s9 = sld [smem:[#allocation2 + $0x4]] }
  0x2c   :  { %v161_v11 = vsub.s32 %v158_v7, %v78_v6  ;;  %v1833_v44 = vcombine.high %v1821_v35, %v1821_v35  ;;  %s2007_s1 = sld [smem:[#allocation2 + $0x6]] }
  0x2d   :  { %v317_v9 = vstv %s1765_s16  ;;  %1626 = vset.pattern.permute.xlu0 %v1712_v10  ;;  %v1803_v25 = vrot.slane %v62_v22, %v79_v18  ;;  %v1805_v26 = vrot.slane %v62_v22, %v87_v19  ;;  %v1807_v27 = vrot.slane %v62_v22, %v83_v20  ;;  %s1610_s16 = sld [smem:[#allocation2 + $0x5]] }
  0x2e   :  { %v318_v12 = vmul.f32 0.0, %v317_v9  ;;  %102 = vperm.xlu0 %1626, %v69_v0   ;;  %v1770_v13 = vrot.slane %v67_v5, %v161_v11  ;;  %v1772_v14 = vrot.slane %v155_v8, %v161_v11  ;;  %v1809_v28 = vrot.slane %v62_v22, %v91_v21  ;;  %v1866_v22 = vld [vmem:[%s2088_s5] ss:$0 sm:$0xff]  ;;  %s1872_s5 = sld [smem:[#allocation2 + $0x2]] }
  0x2f   :  { %v1811_v29 = vrot.slane %v1596_v23, %v79_v18  ;;  %v1813_v30 = vrot.slane %v1596_v23, %v87_v19  ;;  %v1815_v31 = vrot.slane %v1596_v23, %v83_v20  ;;  %v1817_v32 = vrot.slane %v1596_v23, %v91_v21 }
  0x30   :  { %v1774_v15 = vadd.f32 %v318_v12, %v69_v0  ;;  %v1778_v16 = vcombine.high %v1770_v13, %v1770_v13  ;;  %v1782_v17 = vcombine.high %v1772_v14, %v1772_v14 }
  0x32   :  { %323 = vst.msk [vmem:[%s2089_s6] sm:$0xf] %vm322_vm0, %v1774_v15  ;;  %328 = vperm.xlu1 %1627, %v1774_v15   ;;  %206 = vmatprep.subr.mxu0 %v1778_v16 }
  0x33   :  { %276 = vmatprep.subr.mxu1 %v1782_v17  ;;  %207 = vmatpush1.xpose.msra.mxu0 %v1770_v13 }
  0x34   :  { %277 = vmatpush1.xpose.msra.mxu1 %v1772_v14  ;;  %385 = vmatprep.subr.mxu0 %v1778_v16 }
  0x35   :  { %455 = vmatprep.subr.mxu1 %v1782_v17 }
  0x36   :  { %1628 = vset.pattern.permute.xlu1 %v1712_v10 }
  0x37   :  { %336 = vperm.xlu1 %1628, %v1774_v15  }
  0x3b   :  { %1629 = vset.pattern.permute.xlu1 %v1710_v2 }
  0xa4   :  { %v74_v24 = vpop.permute.xlu0 %73 }
  0xa5   :  { %v97_v33 = vmul.f32 %v1803_v25, %v74_v24  ;;  %v99_v34 = vmul.f32 %v1805_v26, %v74_v24  ;;  %v98_v36 = vmul.f32 %v1807_v27, %v74_v24  ;;  %v100_v38 = vmul.f32 %v1809_v28, %v74_v24 }
  0xa9   :  { %v103_v39 = vpop.permute.xlu0 %102 }
  0xaa   :  { %v126_v40 = vmul.f32 %v1811_v29, %v103_v39  ;;  %v128_v41 = vmul.f32 %v1813_v30, %v103_v39  ;;  %v127_v42 = vmul.f32 %v1815_v31, %v103_v39  ;;  %v129_v43 = vmul.f32 %v1817_v32, %v103_v39 }
  0xac   :  { %v131_v46 = vadd.f32 %v127_v42, %v98_v36  ;;  %v133_v47 = vadd.f32 %v129_v43, %v100_v38  ;;  %v130_v48 = vadd.f32 %v126_v40, %v97_v33  ;;  %v132_v49 = vadd.f32 %v128_v41, %v99_v34 }
  0xad   :  { %v329_v50 = vpop.permute.xlu1 %328 }
  0xae   :  { %v141_v51 = vadd.f32 %v1833_v44, %v131_v46  ;;  %v143_v52 = vadd.f32 %v1837_v45, %v133_v47  ;;  %v140_v53 = vadd.f32 %v130_v48, %v1821_v35  ;;  %v142_v54 = vadd.f32 %v132_v49, %v1824_v37 }
  0xaf   :  { %v331_v59 = vmul.f32 %v329_v50, %v1803_v25  ;;  %v332_v60 = vmul.f32 %v329_v50, %v1807_v27  ;;  %v333_v61 = vmul.f32 %v329_v50, %v1805_v26  ;;  %v334_v3 = vmul.f32 %v329_v50, %v1809_v28 }
  0xb0   :  { %v145_v55 = vmax.f32 %v141_v51, 0.0  ;;  %v147_v56 = vmax.f32 %v143_v52, 0.0  ;;  %v144_v57 = vmax.f32 %v140_v53, 0.0  ;;  %v146_v58 = vmax.f32 %v142_v54, 0.0 }
  0xb1   :  { %v496_v49 = vstv %s1598_s22 }
  0xb2   :  { %v337_v62 = vpop.permute.xlu1 %336  ;;  %240 = vmatprep.mubr.f32.mxu0 %v145_v55  ;;  %310 = vmatprep.mubr.f32.mxu1 %v147_v56 }
  0xb3   :  { %v339_v63 = vmul.f32 %v337_v62, %v1811_v29  ;;  %v340_v0 = vmul.f32 %v337_v62, %v1815_v31  ;;  %v341_v1 = vmul.f32 %v337_v62, %v1813_v30  ;;  %v342_v2 = vmul.f32 %v337_v62, %v1817_v32  ;;  %241 = vmatmul.mubr.f32.vlgmr.msra.gmra.mxu0 %v144_v57 }
  0xb4   :  { %311 = vmatmul.mubr.f32.vlgmr.msra.gmra.mxu1 %v146_v58  ;;  %386 = vmatpush1.xpose.msra.mxu0 %v1770_v13 }
  0xb5   :  { %v343_v4 = vadd.f32 %v339_v63, %v331_v59  ;;  %v345_v5 = vadd.f32 %v341_v1, %v333_v61  ;;  %v344_v6 = vadd.f32 %v340_v0, %v332_v60  ;;  %456 = vmatpush1.xpose.msra.mxu1 %v1772_v14  ;;  %v346_v7 = vadd.f32 %v342_v2, %v334_v3 }
  0xb6   :  { %565 = vmatprep.subr.mxu0 %v1778_v16  ;;  %635 = vmatprep.subr.mxu1 %v1782_v17 }
  0xb7   :  { %v348_v8 = vadd.f32 %v344_v6, %v1833_v44  ;;  %v347_v10 = vadd.f32 %v343_v4, %v1821_v35  ;;  %v349_v11 = vadd.f32 %v345_v5, %v1824_v37  ;;  %v350_v12 = vadd.f32 %v346_v7, %v1837_v45 }
  0xb9   :  { %v352_v18 = vmax.f32 %v348_v8, 0.0  ;;  %v351_v19 = vmax.f32 %v347_v10, 0.0  ;;  %v353_v20 = vmax.f32 %v349_v11, 0.0  ;;  %v354_v21 = vmax.f32 %v350_v12, 0.0 }
  0xbb   :  { %419 = vmatprep.mubr.f32.mxu0 %v352_v18  ;;  %489 = vmatprep.mubr.f32.mxu1 %v354_v21 }
  0xbc   :  { %420 = vmatmul.mubr.f32.vlgmr.msra.gmra.mxu0 %v351_v19  ;;  %490 = vmatmul.mubr.f32.vlgmr.msra.gmra.mxu1 %v353_v20 }
  0xbd   :  { %566 = vmatpush1.xpose.msra.mxu0 %v1770_v13  ;;  %636 = vmatpush1.xpose.msra.mxu1 %v1772_v14 }
  0xbe   :  { %745 = vmatprep.subr.mxu0 %v1778_v16  ;;  %815 = vmatprep.subr.mxu1 %v1782_v17 }
 0x173   :  { %v242_v23 = vpop.f32.mrf.mxu0 }
 0x174   :  { %v243_v24 = vadd.f32 %v1866_v22, %v242_v23  ;;  %v312_v33 = vpop.f32.mrf.mxu1 }
 0x175   :  { %v244_v34 = vpop.f32.mrf.mxu0 }
 0x176   :  { %v313_v36 = vadd.f32 %v312_v33, %v243_v24  ;;  %v314_v38 = vpop.f32.mrf.mxu1 }
 0x178   :  { %1633 = vtanh.f32 %v313_v36 }
 0x17c   :  { %v421_v39 = vpop.f32.mrf.mxu0  ;;  %v491_v41 = vpop.f32.mrf.mxu1 }
 0x17d   :  { %v422_v40 = vadd.f32 %v1866_v22, %v421_v39 }
 0x17e   :  { %v423_v42 = vpop.f32.mrf.mxu0  ;;  %v493_v46 = vpop.f32.mrf.mxu1 }
 0x17f   :  { %v492_v43 = vadd.f32 %v491_v41, %v422_v40 }
 0x181   :  { %1635 = vtanh.f32 %v492_v43 }
 0x185   :  { %v1634_v47 = vpop.eup %1633 }
 0x186   :  { %v320_v48 = vmul.f32 %v1634_v47, %v317_v9  ;;  %v676_v9 = vstv %s1872_s5  ;;  %s1616_s5 = sld [smem:[#allocation2 + $0x7]] }
 0x188   :  { %v321_v50 = vsub.f32 0.0, %v320_v48 }
 0x18a   :  { %v497_v51 = vmul.f32 %v496_v49, %v321_v50  ;;  %324 = vst.msk [vmem:[%s2090_s7] sm:$0xf] %vm322_vm0, %v321_v50 }
 0x18c   :  { %v498_v52 = vadd.f32 %v497_v51, %v1774_v15 }
 0x18e   :  { %v1636_v53 = vpop.eup %1635  ;;  %516 = vperm.xlu0 %1626, %v498_v52   ;;  %1599 = vst.msk [vmem:[%s2089_s6 + $0x4] sm:$0xf] %vm322_vm0, %v498_v52  ;;  %508 = vperm.xlu1 %1629, %v498_v52  }
 0x18f   :  { %v499_v54 = vmul.f32 %v1636_v53, %v496_v49 }
 0x191   :  { %v1884_v55 = vsub.f32 %v321_v50, %v499_v54 }
 0x193   :  { %1600 = vst.msk [vmem:[%s2090_s7 + $0x4] sm:$0xf] %vm322_vm0, %v1884_v55  ;;  %v677_v15 = vmul.f32 %v676_v9, %v1884_v55 }
 0x195   :  { %v1894_v56 = vadd.f32 %v677_v15, %v498_v52 }
 0x197   :  { %696 = vperm.xlu0 %1626, %v1894_v56   ;;  %1602 = vst.msk [vmem:[%s2089_s6 + $0x8] sm:$0xf] %vm322_vm0, %v1894_v56  ;;  %688 = vperm.xlu1 %1629, %v1894_v56  }
 0x209   :  { %v517_v57 = vpop.permute.xlu0 %516  ;;  %v509_v58 = vpop.permute.xlu1 %508 }
 0x20a   :  { %v519_v59 = vmul.f32 %v517_v57, %v1811_v29  ;;  %v520_v60 = vmul.f32 %v517_v57, %v1815_v31  ;;  %v521_v61 = vmul.f32 %v517_v57, %v1813_v30  ;;  %v522_v62 = vmul.f32 %v517_v57, %v1817_v32 }
 0x20b   :  { %v511_v63 = vmul.f32 %v509_v58, %v1803_v25  ;;  %v512_v0 = vmul.f32 %v509_v58, %v1807_v27  ;;  %v513_v1 = vmul.f32 %v509_v58, %v1805_v26  ;;  %v514_v2 = vmul.f32 %v509_v58, %v1809_v28 }
 0x20d   :  { %v523_v3 = vadd.f32 %v519_v59, %v511_v63  ;;  %v525_v4 = vadd.f32 %v521_v61, %v513_v1  ;;  %v524_v5 = vadd.f32 %v520_v60, %v512_v0  ;;  %v526_v6 = vadd.f32 %v522_v62, %v514_v2 }
 0x20f   :  { %v528_v7 = vadd.f32 %v524_v5, %v1833_v44  ;;  %v530_v8 = vadd.f32 %v526_v6, %v1837_v45  ;;  %v527_v10 = vadd.f32 %v523_v3, %v1821_v35  ;;  %v529_v11 = vadd.f32 %v525_v4, %v1824_v37 }
 0x211   :  { %v532_v12 = vmax.f32 %v528_v7, 0.0  ;;  %v534_v18 = vmax.f32 %v530_v8, 0.0  ;;  %v531_v21 = vmax.f32 %v527_v10, 0.0  ;;  %v533_v23 = vmax.f32 %v529_v11, 0.0 }
 0x212   :  { %v697_v19 = vpop.permute.xlu0 %696  ;;  %v689_v20 = vpop.permute.xlu1 %688  ;;  %v856_v7 = vstv %s1604_s8 }
 0x213   :  { %v699_v24 = vmul.f32 %v697_v19, %v1811_v29  ;;  %v700_v33 = vmul.f32 %v697_v19, %v1815_v31  ;;  %v701_v34 = vmul.f32 %v697_v19, %v1813_v30  ;;  %v702_v36 = vmul.f32 %v697_v19, %v1817_v32  ;;  %599 = vmatprep.mubr.f32.mxu0 %v532_v12 }
 0x214   :  { %669 = vmatprep.mubr.f32.mxu1 %v534_v18  ;;  %v691_v38 = vmul.f32 %v689_v20, %v1803_v25  ;;  %v692_v39 = vmul.f32 %v689_v20, %v1807_v27  ;;  %v693_v40 = vmul.f32 %v689_v20, %v1805_v26  ;;  %v694_v41 = vmul.f32 %v689_v20, %v1809_v28 }
 0x215   :  { %600 = vmatmul.mubr.f32.vlgmr.msra.gmra.mxu0 %v531_v21  ;;  %670 = vmatmul.mubr.f32.vlgmr.msra.gmra.mxu1 %v533_v23 }
 0x216   :  { %v703_v42 = vadd.f32 %v699_v24, %v691_v38  ;;  %v705_v43 = vadd.f32 %v701_v34, %v693_v40  ;;  %746 = vmatpush1.xpose.msra.mxu0 %v1770_v13  ;;  %816 = vmatpush1.xpose.msra.mxu1 %v1772_v14  ;;  %v704_v46 = vadd.f32 %v700_v33, %v692_v39 }
 0x217   :  { %v706_v47 = vadd.f32 %v702_v36, %v694_v41  ;;  %925 = vmatprep.subr.mxu0 %v1778_v16  ;;  %995 = vmatprep.subr.mxu1 %v1782_v17 }
 0x218   :  { %v708_v48 = vadd.f32 %v704_v46, %v1833_v44  ;;  %v707_v49 = vadd.f32 %v703_v42, %v1821_v35  ;;  %v709_v50 = vadd.f32 %v705_v43, %v1824_v37 }
 0x219   :  { %v710_v51 = vadd.f32 %v706_v47, %v1837_v45 }
 0x21a   :  { %v712_v52 = vmax.f32 %v708_v48, 0.0  ;;  %v711_v53 = vmax.f32 %v707_v49, 0.0  ;;  %v713_v54 = vmax.f32 %v709_v50, 0.0 }
 0x21b   :  { %v714_v15 = vmax.f32 %v710_v51, 0.0 }
 0x21c   :  { %779 = vmatprep.mubr.f32.mxu0 %v712_v52 }
 0x21d   :  { %849 = vmatprep.mubr.f32.mxu1 %v714_v15  ;;  %780 = vmatmul.mubr.f32.vlgmr.msra.gmra.mxu0 %v711_v53 }
 0x21e   :  { %850 = vmatmul.mubr.f32.vlgmr.msra.gmra.mxu1 %v713_v54  ;;  %926 = vmatpush1.xpose.msra.mxu0 %v1770_v13 }
 0x21f   :  { %996 = vmatpush1.xpose.msra.mxu1 %v1772_v14  ;;  %1105 = vmatprep.subr.mxu0 %v1778_v16 }
 0x220   :  { %1175 = vmatprep.subr.mxu1 %v1782_v17 }
 0x2d5   :  { %v601_v57 = vpop.f32.mrf.mxu0  ;;  %v671_v58 = vpop.f32.mrf.mxu1 }
 0x2d6   :  { %v602_v59 = vadd.f32 %v1866_v22, %v601_v57 }
 0x2d7   :  { %v603_v60 = vpop.f32.mrf.mxu0  ;;  %v673_v61 = vpop.f32.mrf.mxu1 }
 0x2d8   :  { %v672_v62 = vadd.f32 %v671_v58, %v602_v59 }
 0x2da   :  { %1637 = vtanh.f32 %v672_v62 }
 0x2dd   :  { %v781_v63 = vpop.f32.mrf.mxu0 }
 0x2de   :  { %v782_v0 = vadd.f32 %v1866_v22, %v781_v63  ;;  %v851_v1 = vpop.f32.mrf.mxu1 }
 0x2df   :  { %v783_v2 = vpop.f32.mrf.mxu0 }
 0x2e0   :  { %v852_v3 = vadd.f32 %v851_v1, %v782_v0  ;;  %v853_v4 = vpop.f32.mrf.mxu1 }
 0x2e2   :  { %1639 = vtanh.f32 %v852_v3 }
 0x2e7   :  { %v1638_v5 = vpop.eup %1637 }
 0x2e8   :  { %v679_v6 = vmul.f32 %v1638_v5, %v676_v9  ;;  %v1036_v9 = vstv %s1939_s9 }
 0x2ea   :  { %v680_v8 = vsub.f32 %v1884_v55, %v679_v6 }
 0x2ec   :  { %1603 = vst.msk [vmem:[%s2090_s7 + $0x8] sm:$0xf] %vm322_vm0, %v680_v8  ;;  %v857_v10 = vmul.f32 %v856_v7, %v680_v8 }
 0x2ee   :  { %v858_v11 = vadd.f32 %v857_v10, %v1894_v56 }
 0x2ef   :  { %v1640_v12 = vpop.eup %1639 }
 0x2f0   :  { %v859_v18 = vmul.f32 %v1640_v12, %v856_v7  ;;  %876 = vperm.xlu0 %1626, %v858_v11   ;;  %1605 = vst.msk [vmem:[%s2089_s6 + $0xc] sm:$0xf] %vm322_vm0, %v858_v11  ;;  %868 = vperm.xlu1 %1629, %v858_v11  }
 0x2f2   :  { %v1952_v19 = vsub.f32 %v680_v8, %v859_v18 }
 0x2f4   :  { %1606 = vst.msk [vmem:[%s2090_s7 + $0xc] sm:$0xf] %vm322_vm0, %v1952_v19  ;;  %v1037_v55 = vmul.f32 %v1036_v9, %v1952_v19 }
 0x2f6   :  { %v1962_v56 = vadd.f32 %v1037_v55, %v858_v11 }
 0x2f8   :  { %1056 = vperm.xlu0 %1626, %v1962_v56   ;;  %1608 = vst.msk [vmem:[%s2089_s6 + $0x10] sm:$0xf] %vm322_vm0, %v1962_v56  ;;  %1048 = vperm.xlu1 %1629, %v1962_v56  }
 0x36b   :  { %v877_v20 = vpop.permute.xlu0 %876  ;;  %v869_v21 = vpop.permute.xlu1 %868 }
 0x36c   :  { %v879_v23 = vmul.f32 %v877_v20, %v1811_v29  ;;  %v880_v24 = vmul.f32 %v877_v20, %v1815_v31  ;;  %v881_v33 = vmul.f32 %v877_v20, %v1813_v30  ;;  %v882_v34 = vmul.f32 %v877_v20, %v1817_v32 }
 0x36d   :  { %v871_v36 = vmul.f32 %v869_v21, %v1803_v25  ;;  %v872_v38 = vmul.f32 %v869_v21, %v1807_v27  ;;  %v873_v39 = vmul.f32 %v869_v21, %v1805_v26  ;;  %v874_v40 = vmul.f32 %v869_v21, %v1809_v28 }
 0x36f   :  { %v883_v41 = vadd.f32 %v879_v23, %v871_v36  ;;  %v885_v42 = vadd.f32 %v881_v33, %v873_v39  ;;  %v884_v43 = vadd.f32 %v880_v24, %v872_v38  ;;  %v886_v46 = vadd.f32 %v882_v34, %v874_v40 }
 0x371   :  { %v888_v47 = vadd.f32 %v884_v43, %v1833_v44  ;;  %v890_v48 = vadd.f32 %v886_v46, %v1837_v45  ;;  %v887_v49 = vadd.f32 %v883_v41, %v1821_v35  ;;  %v889_v50 = vadd.f32 %v885_v42, %v1824_v37 }
 0x372   :  { %v1216_v43 = vstv %s1610_s16 }
 0x373   :  { %v892_v51 = vmax.f32 %v888_v47, 0.0  ;;  %v894_v52 = vmax.f32 %v890_v48, 0.0  ;;  %v1057_v53 = vpop.permute.xlu0 %1056  ;;  %v1049_v54 = vpop.permute.xlu1 %1048  ;;  %v891_v15 = vmax.f32 %v887_v49, 0.0  ;;  %v893_v57 = vmax.f32 %v889_v50, 0.0 }
 0x374   :  { %v1059_v58 = vmul.f32 %v1057_v53, %v1811_v29  ;;  %v1060_v59 = vmul.f32 %v1057_v53, %v1815_v31  ;;  %v1061_v60 = vmul.f32 %v1057_v53, %v1813_v30  ;;  %v1062_v61 = vmul.f32 %v1057_v53, %v1817_v32 }
 0x375   :  { %959 = vmatprep.mubr.f32.mxu0 %v892_v51  ;;  %1029 = vmatprep.mubr.f32.mxu1 %v894_v52  ;;  %v1051_v62 = vmul.f32 %v1049_v54, %v1803_v25  ;;  %v1052_v63 = vmul.f32 %v1049_v54, %v1807_v27  ;;  %v1053_v0 = vmul.f32 %v1049_v54, %v1805_v26 }
 0x376   :  { %v1054_v1 = vmul.f32 %v1049_v54, %v1809_v28  ;;  %960 = vmatmul.mubr.f32.vlgmr.msra.gmra.mxu0 %v891_v15  ;;  %1030 = vmatmul.mubr.f32.vlgmr.msra.gmra.mxu1 %v893_v57 }
 0x377   :  { %v1063_v2 = vadd.f32 %v1059_v58, %v1051_v62  ;;  %v1065_v3 = vadd.f32 %v1061_v60, %v1053_v0  ;;  %1106 = vmatpush1.xpose.msra.mxu0 %v1770_v13  ;;  %1176 = vmatpush1.xpose.msra.mxu1 %v1772_v14  ;;  %v1064_v4 = vadd.f32 %v1060_v59, %v1052_v63 }
 0x378   :  { %v1066_v5 = vadd.f32 %v1062_v61, %v1054_v1  ;;  %1285 = vmatprep.subr.mxu0 %v1778_v16  ;;  %1355 = vmatprep.subr.mxu1 %v1782_v17 }
 0x379   :  { %v1068_v6 = vadd.f32 %v1064_v4, %v1833_v44  ;;  %v1067_v7 = vadd.f32 %v1063_v2, %v1821_v35  ;;  %v1069_v8 = vadd.f32 %v1065_v3, %v1824_v37 }
 0x37a   :  { %v1070_v10 = vadd.f32 %v1066_v5, %v1837_v45 }
 0x37b   :  { %v1072_v11 = vmax.f32 %v1068_v6, 0.0  ;;  %v1071_v12 = vmax.f32 %v1067_v7, 0.0  ;;  %v1073_v18 = vmax.f32 %v1069_v8, 0.0 }
 0x37c   :  { %v1074_v55 = vmax.f32 %v1070_v10, 0.0 }
 0x37d   :  { %1139 = vmatprep.mubr.f32.mxu0 %v1072_v11 }
 0x37e   :  { %1209 = vmatprep.mubr.f32.mxu1 %v1074_v55  ;;  %1140 = vmatmul.mubr.f32.vlgmr.msra.gmra.mxu0 %v1071_v12 }
 0x37f   :  { %1210 = vmatmul.mubr.f32.vlgmr.msra.gmra.mxu1 %v1073_v18  ;;  %1286 = vmatpush1.xpose.msra.mxu0 %v1770_v13 }
 0x380   :  { %1356 = vmatpush1.xpose.msra.mxu1 %v1772_v14  ;;  %1465 = vmatprep.subr.mxu0 %v1778_v16 }
 0x381   :  { %1535 = vmatprep.subr.mxu1 %v1782_v17 }
 0x436   :  { %v961_v20 = vpop.f32.mrf.mxu0  ;;  %v1031_v21 = vpop.f32.mrf.mxu1 }
 0x437   :  { %v962_v23 = vadd.f32 %v1866_v22, %v961_v20 }
 0x438   :  { %v963_v24 = vpop.f32.mrf.mxu0  ;;  %v1033_v33 = vpop.f32.mrf.mxu1 }
 0x439   :  { %v1032_v34 = vadd.f32 %v1031_v21, %v962_v23 }
 0x43b   :  { %1641 = vtanh.f32 %v1032_v34 }
 0x43e   :  { %v1141_v36 = vpop.f32.mrf.mxu0 }
 0x43f   :  { %v1142_v38 = vadd.f32 %v1866_v22, %v1141_v36  ;;  %v1211_v39 = vpop.f32.mrf.mxu1 }
 0x440   :  { %v1143_v40 = vpop.f32.mrf.mxu0 }
 0x441   :  { %v1212_v41 = vadd.f32 %v1211_v39, %v1142_v38  ;;  %v1213_v42 = vpop.f32.mrf.mxu1 }
 0x443   :  { %1643 = vtanh.f32 %v1212_v41 }
 0x448   :  { %v1642_v16 = vpop.eup %1641 }
 0x449   :  { %v1039_v17 = vmul.f32 %v1642_v16, %v1036_v9  ;;  %v1396_v9 = vstv %s2007_s1 }
 0x44b   :  { %v1040_v46 = vsub.f32 %v1952_v19, %v1039_v17 }
 0x44d   :  { %1609 = vst.msk [vmem:[%s2090_s7 + $0x10] sm:$0xf] %vm322_vm0, %v1040_v46  ;;  %v1217_v47 = vmul.f32 %v1216_v43, %v1040_v46 }
 0x44f   :  { %v1218_v48 = vadd.f32 %v1217_v47, %v1962_v56 }
 0x450   :  { %v1644_v49 = vpop.eup %1643 }
 0x451   :  { %v1219_v50 = vmul.f32 %v1644_v49, %v1216_v43  ;;  %1236 = vperm.xlu0 %1626, %v1218_v48   ;;  %1611 = vst.msk [vmem:[%s2089_s6 + $0x14] sm:$0xf] %vm322_vm0, %v1218_v48  ;;  %1228 = vperm.xlu1 %1629, %v1218_v48  }
 0x453   :  { %v2020_v51 = vsub.f32 %v1040_v46, %v1219_v50  ;;  %v1576_v50 = vstv %s1616_s5 }
 0x455   :  { %1612 = vst.msk [vmem:[%s2090_s7 + $0x14] sm:$0xf] %vm322_vm0, %v2020_v51  ;;  %v1397_v19 = vmul.f32 %v1396_v9, %v2020_v51 }
 0x457   :  { %v2030_v56 = vadd.f32 %v1397_v19, %v1218_v48 }
 0x459   :  { %1416 = vperm.xlu0 %1626, %v2030_v56   ;;  %1614 = vst.msk [vmem:[%s2089_s6 + $0x18] sm:$0xf] %vm322_vm0, %v2030_v56  ;;  %1408 = vperm.xlu1 %1629, %v2030_v56  }
 0x4cc   :  { %v1237_v52 = vpop.permute.xlu0 %1236  ;;  %v1229_v53 = vpop.permute.xlu1 %1228 }
 0x4cd   :  { %v1239_v54 = vmul.f32 %v1237_v52, %v1811_v29  ;;  %v1240_v15 = vmul.f32 %v1237_v52, %v1815_v31  ;;  %v1241_v57 = vmul.f32 %v1237_v52, %v1813_v30  ;;  %v1242_v58 = vmul.f32 %v1237_v52, %v1817_v32 }
 0x4ce   :  { %v1231_v59 = vmul.f32 %v1229_v53, %v1803_v25  ;;  %v1232_v60 = vmul.f32 %v1229_v53, %v1807_v27  ;;  %v1233_v61 = vmul.f32 %v1229_v53, %v1805_v26  ;;  %v1234_v62 = vmul.f32 %v1229_v53, %v1809_v28 }
 0x4d0   :  { %v1243_v63 = vadd.f32 %v1239_v54, %v1231_v59  ;;  %v1245_v0 = vadd.f32 %v1241_v57, %v1233_v61  ;;  %v1244_v1 = vadd.f32 %v1240_v15, %v1232_v60  ;;  %v1246_v2 = vadd.f32 %v1242_v58, %v1234_v62 }
 0x4d2   :  { %v1248_v3 = vadd.f32 %v1244_v1, %v1833_v44  ;;  %v1250_v4 = vadd.f32 %v1246_v2, %v1837_v45  ;;  %v1247_v5 = vadd.f32 %v1243_v63, %v1821_v35  ;;  %v1249_v6 = vadd.f32 %v1245_v0, %v1824_v37 }
 0x4d4   :  { %v1252_v7 = vmax.f32 %v1248_v3, 0.0  ;;  %v1254_v8 = vmax.f32 %v1250_v4, 0.0  ;;  %v1417_v10 = vpop.permute.xlu0 %1416  ;;  %v1409_v11 = vpop.permute.xlu1 %1408  ;;  %v1251_v12 = vmax.f32 %v1247_v5, 0.0  ;;  %v1253_v18 = vmax.f32 %v1249_v6, 0.0 }
 0x4d5   :  { %v1419_v55 = vmul.f32 %v1417_v10, %v1811_v29  ;;  %v1420_v20 = vmul.f32 %v1417_v10, %v1815_v31  ;;  %v1421_v21 = vmul.f32 %v1417_v10, %v1813_v30  ;;  %v1422_v23 = vmul.f32 %v1417_v10, %v1817_v32 }
 0x4d6   :  { %1319 = vmatprep.mubr.f32.mxu0 %v1252_v7  ;;  %1389 = vmatprep.mubr.f32.mxu1 %v1254_v8  ;;  %v1411_v24 = vmul.f32 %v1409_v11, %v1803_v25  ;;  %v1412_v33 = vmul.f32 %v1409_v11, %v1807_v27  ;;  %v1413_v34 = vmul.f32 %v1409_v11, %v1805_v26 }
 0x4d7   :  { %v1414_v36 = vmul.f32 %v1409_v11, %v1809_v28  ;;  %1320 = vmatmul.mubr.f32.vlgmr.msra.gmra.mxu0 %v1251_v12  ;;  %1390 = vmatmul.mubr.f32.vlgmr.msra.gmra.mxu1 %v1253_v18 }
 0x4d8   :  { %v1423_v38 = vadd.f32 %v1419_v55, %v1411_v24  ;;  %v1424_v29 = vadd.f32 %v1420_v20, %v1412_v33  ;;  %v1425_v39 = vadd.f32 %v1421_v21, %v1413_v34  ;;  %1466 = vmatpush1.xpose.msra.mxu0 %v1770_v13  ;;  %1536 = vmatpush1.xpose.msra.mxu1 %v1772_v14 }
 0x4d9   :  { %v1426_v30 = vadd.f32 %v1422_v23, %v1414_v36 }
 0x4da   :  { %v1427_v31 = vadd.f32 %v1423_v38, %v1821_v35  ;;  %v1429_v25 = vadd.f32 %v1425_v39, %v1824_v37  ;;  %v1428_v27 = vadd.f32 %v1424_v29, %v1833_v44 }
 0x4db   :  { %v1430_v26 = vadd.f32 %v1426_v30, %v1837_v45 }
 0x4dc   :  { %v1432_v32 = vmax.f32 %v1428_v27, 0.0  ;;  %v1431_v28 = vmax.f32 %v1427_v31, 0.0  ;;  %v1433_v40 = vmax.f32 %v1429_v25, 0.0 }
 0x4dd   :  { %v1434_v41 = vmax.f32 %v1430_v26, 0.0 }
 0x4de   :  { %1499 = vmatprep.mubr.f32.mxu0 %v1432_v32 }
 0x4df   :  { %1569 = vmatprep.mubr.f32.mxu1 %v1434_v41  ;;  %1500 = vmatmul.mubr.f32.vlgmr.msra.gmra.mxu0 %v1431_v28 }
 0x4e0   :  { %1570 = vmatmul.mubr.f32.vlgmr.msra.gmra.mxu1 %v1433_v40 }
 0x597   :  { %v1321_v13 = vpop.f32.mrf.mxu0  ;;  %v1391_v14 = vpop.f32.mrf.mxu1 }
 0x598   :  { %v1322_v42 = vadd.f32 %v1866_v22, %v1321_v13 }
 0x599   :  { %v1323_v35 = vpop.f32.mrf.mxu0  ;;  %v1393_v16 = vpop.f32.mrf.mxu1 }
 0x59a   :  { %v1392_v37 = vadd.f32 %v1391_v14, %v1322_v42 }
 0x59c   :  { %1645 = vtanh.f32 %v1392_v37 }
 0x59f   :  { %v1501_v44 = vpop.f32.mrf.mxu0 }
 0x5a0   :  { %v1502_v45 = vadd.f32 %v1866_v22, %v1501_v44  ;;  %v1571_v17 = vpop.f32.mrf.mxu1 }
 0x5a1   :  { %v1503_v43 = vpop.f32.mrf.mxu0 }
 0x5a2   :  { %v1572_v46 = vadd.f32 %v1571_v17, %v1502_v45  ;;  %v1573_v47 = vpop.f32.mrf.mxu1 }
 0x5a4   :  { %1647 = vtanh.f32 %v1572_v46 }
 0x5a9   :  { %v1646_v48 = vpop.eup %1645 }
 0x5aa   :  { %v1399_v49 = vmul.f32 %v1646_v48, %v1396_v9 }
 0x5ac   :  { %v1400_v19 = vsub.f32 %v2020_v51, %v1399_v49 }
 0x5ae   :  { %1615 = vst.msk [vmem:[%s2090_s7 + $0x18] sm:$0xf] %vm322_vm0, %v1400_v19  ;;  %v1577_v52 = vmul.f32 %v1576_v50, %v1400_v19 }
 0x5b0   :  { %v1578_v22 = vadd.f32 %v1577_v52, %v2030_v56 }
 0x5b1   :  { %v1648_v53 = vpop.eup %1647 }
 0x5b2   :  { %v1579_v54 = vmul.f32 %v1648_v53, %v1576_v50  ;;  %1617 = vst.msk [vmem:[%s2089_s6 + $0x1c] sm:$0xf] %vm322_vm0, %v1578_v22 }
 0x5b4   :  { %v1580_v15 = vsub.f32 %v1400_v19, %v1579_v54 }
 0x5b6   :  { %1618 = vst.msk [vmem:[%s2090_s7 + $0x1c] sm:$0xf] %vm322_vm0, %v1580_v15 }
 0x5b7   :  { %1593 = vsyncpa [#allocation3], 1 }
 0x5b8   :  { %1594 = vsyncpa [#allocation7], 1 }
 0x5b9   :  { %1595 = vsyncpa [#allocation4], 1 }

</bundles_post_ra>
